<compile_context>
chip_gen: v6e
topology: v6e:2x2x1
jax: 0.10.0
libtpu: 0.0.40
codegen_flags: <defaults>
</compile_context>

<pallas_src>
import jax
import jax.numpy as jnp
import numpy as np
from jax import lax
from jax.experimental import pallas as pl
from jax.experimental.pallas import tpu as pltpu

LANES = 128
# 2048 rows x 128 lanes x 4 B = 1 MiB per f32 input tile; x2 double-buffering
# x up to 7 streams = ~14 MiB of input buffers.
MAX_BLOCK_ROWS = 2048
# Above v5e's 16 MiB scoped default, below v6e/v7x defaults and physical VMEM.
VMEM_LIMIT_BYTES = 28 * 1024 * 1024
# Leading "parallel" grid axis: shards the row range across TensorCores on
# multi-TC chips (v7x); on single-TC chips it just iterates sequentially.
NUM_ROW_SPLITS = 2


def _cdiv(a, b):
    return (a + b - 1) // b


def _round_up(x, m):
    return ((x + m - 1) // m) * m


def _make_fused_sse_kernel(pair_indices, n_inputs, *, total_rows, block_rows,
                           n_blocks, steps_per_split, num_splits):
    """Kernel: per pair (ia, ib), accumulate sum((x[ia]-x[ib])^2) of the
    current (block_rows, 128) tile into a resident (8, 128) slab per pair."""

    sub_blocks = block_rows // 8
    has_tail = (total_rows % block_rows) != 0
    has_ghost = steps_per_split * num_splits > n_blocks
    # First global block index that must take the masked path.
    mask_from = (n_blocks - 1) if has_tail else n_blocks

    def kernel(*refs):
        in_refs = refs[:n_inputs]
        out_ref = refs[n_inputs]
        c = pl.program_id(0)
        i = pl.program_id(1)
        g = c * steps_per_split + i  # global block index (may be a ghost step)

        @pl.when(i == 0)
        def _init():
            out_ref[...] = jnp.zeros_like(out_ref)

        # Each distinct tensor tile is loaded from VMEM exactly once.
        vals = [r[...].astype(jnp.float32) for r in in_refs]

        def accumulate(masked):
            if masked:
                rows = (lax.broadcasted_iota(jnp.int32, (block_rows, LANES), 0)
                        + g * block_rows)
                valid = rows < total_rows
            for k, (ia, ib) in enumerate(pair_indices):
                d = vals[ia] - vals[ib]
                sq = d * d
                if masked:
                    sq = jnp.where(valid, sq, 0.0)
                # Reduce the tile to an (8, 128) slab with leading-axis vreg
                # adds (pure VPU, no cross-lane XLU), then accumulate into the
                # tiny resident accumulator.
                out_ref[0, k] += sq.reshape(sub_blocks, 8, LANES).sum(axis=0)

        if not (has_tail or has_ghost):
            accumulate(False)
        else:
            # Steady-state full blocks: unmasked path.
            @pl.when(g < mask_from)
            def _full():
                accumulate(False)

            # Final partial block and/or ghost steps of the last split:
            # masked path (ghost steps are fully masked -> contribute 0).
            @pl.when(g >= mask_from)
            def _masked():
                accumulate(True)

    return kernel


def fused_sse(tensors, pairs, *, max_block_rows=MAX_BLOCK_ROWS):
    """Fused sum-of-squared-errors.

    tensors: list of arrays, all with the same shape.
    pairs:   list of (ia, ib) index pairs into `tensors`.
    Returns a (len(pairs),) float32 vector with sum((tensors[ia]-tensors[ib])**2)
    for each pair, reading each distinct tensor from HBM exactly once.
    """
    shape = tensors[0].shape
    for t in tensors:
        if t.shape != shape:
            raise ValueError("all tensors in a fused SSE group must share a shape")

    n = int(np.prod(shape))
    rem = n % LANES
    main = n - rem
    n_pairs = len(pairs)
    n_inputs = len(tensors)

    flats = [t.reshape(-1) for t in tensors]

    # <128-element ragged tail handled in plain XLA (tiny), so the kernel
    # never needs a padded HBM copy of any input.
    if rem:
        tails = [f[main:].astype(jnp.float32) for f in flats]
        tail_sse = jnp.stack(
            [jnp.sum((tails[ia] - tails[ib]) ** 2) for ia, ib in pairs])
    else:
        tail_sse = None

    if main == 0:
        return tail_sse  # everything fit in the tail

    total_rows = main // LANES
    if rem:
        packed = [f[:main].reshape(total_rows, LANES) for f in flats]
    else:
        packed = [f.reshape(total_rows, LANES) for f in flats]

    # Lane-dense tiles; rows kept a multiple of 16 (safe for bf16 packing too).
    block_rows = min(max_block_rows, _round_up(total_rows, 16))
    n_blocks = _cdiv(total_rows, block_rows)
    num_splits = NUM_ROW_SPLITS if n_blocks >= NUM_ROW_SPLITS else 1
    steps_per_split = _cdiv(n_blocks, num_splits)

    if steps_per_split * num_splits > n_blocks:
        def in_map(c, i):
            # Clamp ghost steps of the last split onto a valid block; the
            # kernel masks out their contribution.
            return (jnp.minimum(c * steps_per_split + i, n_blocks - 1), 0)
    else:
        def in_map(c, i):
            return (c * steps_per_split + i, 0)

    kernel = _make_fused_sse_kernel(
        tuple(pairs), n_inputs, total_rows=total_rows, block_rows=block_rows,
        n_blocks=n_blocks, steps_per_split=steps_per_split,
        num_splits=num_splits)

    in_bytes = sum(int(np.dtype(t.dtype).itemsize) * main for t in tensors)
    out_bytes = num_splits * n_pairs * 8 * LANES * 4
    cost = pl.CostEstimate(flops=3 * n_pairs * main, transcendentals=0,
                           bytes_accessed=in_bytes + out_bytes)

    out = pl.pallas_call(
        kernel,
        out_shape=jax.ShapeDtypeStruct((num_splits, n_pairs, 8, LANES),
                                       jnp.float32),
        grid_spec=pltpu.PrefetchScalarGridSpec(
            num_scalar_prefetch=0,
            grid=(num_splits, steps_per_split),
            in_specs=[pl.BlockSpec((block_rows, LANES), in_map)] * n_inputs,
            out_specs=pl.BlockSpec((1, n_pairs, 8, LANES),
                                   lambda c, i: (c, 0, 0, 0)),
        ),
        compiler_params=pltpu.CompilerParams(
            dimension_semantics=("parallel", "arbitrary"),
            vmem_limit_bytes=VMEM_LIMIT_BYTES,
        ),
        cost_estimate=cost,
    )(*packed)

    # Tiny epilogue: reduce the per-split (8, 128) slabs.
    result = jnp.sum(out, axis=(0, 2, 3))
    if tail_sse is not None:
        result = result + tail_sse
    return result


@jax.jit
def lih_loss_forward(
    input_secret_1,
    input_secret_2,
    secret_rev_1,
    secret_rev_2,
    cover,
    steg_1,
    steg_2,
    steg_dwt_1_low,
    steg_dwt_2_low,
    cover_dwt_low,
    rec_weight_1,
    rec_weight_2,
    guide_weight_1,
    guide_weight_2,
    freq_weight_1,
    freq_weight_2,
):
    # Full-resolution group: `cover` is shared by guide_loss_1 and guide_loss_2.
    full = fused_sse(
        [steg_1, steg_2, secret_rev_1, secret_rev_2, input_secret_1,
         input_secret_2, cover],
        [(0, 6), (1, 6), (2, 4), (3, 5)],
    )
    guide_loss_1 = full[0]
    guide_loss_2 = full[1]
    reconstruction_loss_1 = full[2]
    reconstruction_loss_2 = full[3]

    # DWT (half-resolution) group: `cover_dwt_low` shared by both freq losses.
    dwt = fused_sse(
        [steg_dwt_1_low, steg_dwt_2_low, cover_dwt_low],
        [(0, 2), (1, 2)],
    )
    freq_loss_1 = dwt[0]
    freq_loss_2 = dwt[1]

    hide_loss = (
        rec_weight_1 * reconstruction_loss_1
        + rec_weight_2 * reconstruction_loss_2
        + freq_weight_1 * freq_loss_1
        + freq_weight_2 * freq_loss_2
        + guide_weight_1 * guide_loss_1
        + guide_weight_2 * guide_loss_2
    )
    return {"hide_loss": hide_loss}


# TODO(synk): VGGLoss (pretrained VGG16 features) is constructed in
# LIH_Loss.__init__ but never used in forward, so it is intentionally not
# implemented.


if __name__ == "__main__":
    key = jax.random.PRNGKey(0)
    N, C, H, W = 2, 3, 16, 16
    keys = jax.random.split(key, 10)

    input_secret_1 = jax.random.normal(keys[0], (N, C, H, W), jnp.float32)
    input_secret_2 = jax.random.normal(keys[1], (N, C, H, W), jnp.float32)
    secret_rev_1 = jax.random.normal(keys[2], (N, C, H, W), jnp.float32)
    secret_rev_2 = jax.random.normal(keys[3], (N, C, H, W), jnp.float32)
    cover = jax.random.normal(keys[4], (N, C, H, W), jnp.float32)
    steg_1 = jax.random.normal(keys[5], (N, C, H, W), jnp.float32)
    steg_2 = jax.random.normal(keys[6], (N, C, H, W), jnp.float32)
    steg_dwt_1_low = jax.random.normal(keys[7], (N, C, H // 2, W // 2), jnp.float32)
    steg_dwt_2_low = jax.random.normal(keys[8], (N, C, H // 2, W // 2), jnp.float32)
    cover_dwt_low = jax.random.normal(keys[9], (N, C, H // 2, W // 2), jnp.float32)

    rec_weight_1, rec_weight_2 = 1.0, 1.0
    guide_weight_1, guide_weight_2 = 10.0, 10.0
    freq_weight_1, freq_weight_2 = 0.5, 0.5

    out = lih_loss_forward(
        input_secret_1,
        input_secret_2,
        secret_rev_1,
        secret_rev_2,
        cover,
        steg_1,
        steg_2,
        steg_dwt_1_low,
        steg_dwt_2_low,
        cover_dwt_low,
        rec_weight_1,
        rec_weight_2,
        guide_weight_1,
        guide_weight_2,
        freq_weight_1,
        freq_weight_2,
    )
    hide_loss = jax.block_until_ready(out["hide_loss"])

    # Pure-JAX reference (sum-reduction MSE, same weighting).
    def ref_sse(a, b):
        return jnp.sum((a - b) ** 2)

    ref = (
        rec_weight_1 * ref_sse(secret_rev_1, input_secret_1)
        + rec_weight_2 * ref_sse(secret_rev_2, input_secret_2)
        + freq_weight_1 * ref_sse(steg_dwt_1_low, cover_dwt_low)
        + freq_weight_2 * ref_sse(steg_dwt_2_low, cover_dwt_low)
        + guide_weight_1 * ref_sse(steg_1, cover)
        + guide_weight_2 * ref_sse(steg_2, cover)
    )
    np.testing.assert_allclose(
        np.asarray(hide_loss), np.asarray(ref), rtol=1e-5, atol=1e-2
    )

    print("KERNEL_OK")
</pallas_src>

<mosaic_0001>
module attributes {stable_mosaic.version = 11 : i64} {
  func.func @kernel(%arg0: i32, %arg1: i32, %arg2: memref<16x128xf32, #tpu.memory_space<vmem>>, %arg3: memref<16x128xf32, #tpu.memory_space<vmem>>, %arg4: memref<16x128xf32, #tpu.memory_space<vmem>>, %arg5: memref<16x128xf32, #tpu.memory_space<vmem>>, %arg6: memref<16x128xf32, #tpu.memory_space<vmem>>, %arg7: memref<16x128xf32, #tpu.memory_space<vmem>>, %arg8: memref<16x128xf32, #tpu.memory_space<vmem>>, %arg9: memref<1x4x8x128xf32, #tpu.memory_space<vmem>>) attributes {dimension_semantics = [#tpu.dimension_semantics<parallel>, #tpu.dimension_semantics<arbitrary>], iteration_bounds = array<i64: 1, 1>, scalar_prefetch = 0 : i64, scratch_operands = 0 : i64, tpu.core_type = #tpu.core_type<tc>, window_params = [{transform_indices = @transform_0, window_bounds = array<i64: 16, 128>}, {transform_indices = @transform_1, window_bounds = array<i64: 16, 128>}, {transform_indices = @transform_2, window_bounds = array<i64: 16, 128>}, {transform_indices = @transform_3, window_bounds = array<i64: 16, 128>}, {transform_indices = @transform_4, window_bounds = array<i64: 16, 128>}, {transform_indices = @transform_5, window_bounds = array<i64: 16, 128>}, {transform_indices = @transform_6, window_bounds = array<i64: 16, 128>}, {transform_indices = @transform_7, window_bounds = array<i64: 1, 4, 8, 128>}]} {
    %c1_i32 = arith.constant 1 : i32
    %0 = arith.muli %arg0, %c1_i32 : i32
    %1 = arith.addi %0, %arg1 : i32
    %c0_i32 = arith.constant 0 : i32
    %2 = arith.cmpi eq, %arg1, %c0_i32 : i32
    %3 = arith.extui %2 : i1 to i32
    %c0_i32_0 = arith.constant 0 : i32
    %4 = arith.cmpi ne, %3, %c0_i32_0 : i32
    scf.if %4 {
      %cst = arith.constant 0.000000e+00 : f32
      %18 = vector.broadcast %cst : f32 to vector<1x4x8x128xf32>
      %c0_18 = arith.constant 0 : index
      %c0_19 = arith.constant 0 : index
      %c0_20 = arith.constant 0 : index
      %c0_21 = arith.constant 0 : index
      %19 = vector.load %arg9[%c0_18, %c0_19, %c0_20, %c0_21] : memref<1x4x8x128xf32, #tpu.memory_space<vmem>>, vector<1x4x8x128xf32>
      tpu.vector_store %arg9[%c0_18, %c0_19, %c0_20, %c0_21], %18 {strides = array<i32>} : memref<1x4x8x128xf32, #tpu.memory_space<vmem>>, vector<1x4x8x128xf32>,
    } else {
    }
    %c0 = arith.constant 0 : index
    %c0_1 = arith.constant 0 : index
    %5 = vector.load %arg2[%c0, %c0_1] : memref<16x128xf32, #tpu.memory_space<vmem>>, vector<16x128xf32>
    %c0_2 = arith.constant 0 : index
    %c0_3 = arith.constant 0 : index
    %6 = vector.load %arg3[%c0_2, %c0_3] : memref<16x128xf32, #tpu.memory_space<vmem>>, vector<16x128xf32>
    %c0_4 = arith.constant 0 : index
    %c0_5 = arith.constant 0 : index
    %7 = vector.load %arg4[%c0_4, %c0_5] : memref<16x128xf32, #tpu.memory_space<vmem>>, vector<16x128xf32>
    %c0_6 = arith.constant 0 : index
    %c0_7 = arith.constant 0 : index
    %8 = vector.load %arg5[%c0_6, %c0_7] : memref<16x128xf32, #tpu.memory_space<vmem>>, vector<16x128xf32>
    %c0_8 = arith.constant 0 : index
    %c0_9 = arith.constant 0 : index
    %9 = vector.load %arg6[%c0_8, %c0_9] : memref<16x128xf32, #tpu.memory_space<vmem>>, vector<16x128xf32>
    %c0_10 = arith.constant 0 : index
    %c0_11 = arith.constant 0 : index
    %10 = vector.load %arg7[%c0_10, %c0_11] : memref<16x128xf32, #tpu.memory_space<vmem>>, vector<16x128xf32>
    %c0_12 = arith.constant 0 : index
    %c0_13 = arith.constant 0 : index
    %11 = vector.load %arg8[%c0_12, %c0_13] : memref<16x128xf32, #tpu.memory_space<vmem>>, vector<16x128xf32>
    %c0_i32_14 = arith.constant 0 : i32
    %12 = arith.cmpi slt, %1, %c0_i32_14 : i32
    %13 = arith.extui %12 : i1 to i32
    %c0_i32_15 = arith.constant 0 : i32
    %14 = arith.cmpi ne, %13, %c0_i32_15 : i32
    scf.if %14 {
      %18 = arith.subf %5, %11 : vector<16x128xf32>
      %19 = arith.mulf %18, %18 : vector<16x128xf32>
      %c0_18 = arith.constant 0 : index
      %c0_19 = arith.constant 0 : index
      %c0_20 = arith.constant 0 : index
      %c0_21 = arith.constant 0 : index
      %20 = vector.load %arg9[%c0_18, %c0_19, %c0_20, %c0_21] : memref<1x4x8x128xf32, #tpu.memory_space<vmem>>, vector<1x1x8x128xf32>
      %21 = vector.shape_cast %20 : vector<1x1x8x128xf32> to vector<8x128xf32>
      %22 = vector.shape_cast %19 : vector<16x128xf32> to vector<2x8x128xf32>
      %cst = arith.constant dense<0.000000e+00> : vector<8x128xf32>
      %23 = vector.multi_reduction <add>, %22, %cst [0] : vector<2x8x128xf32> to vector<8x128xf32>
      %24 = arith.addf %21, %23 : vector<8x128xf32>
      %c0_22 = arith.constant 0 : index
      %c0_23 = arith.constant 0 : index
      %c0_24 = arith.constant 0 : index
      %c0_25 = arith.constant 0 : index
      %25 = vector.load %arg9[%c0_22, %c0_23, %c0_24, %c0_25] : memref<1x4x8x128xf32, #tpu.memory_space<vmem>>, vector<1x1x8x128xf32>
      %26 = vector.shape_cast %25 : vector<1x1x8x128xf32> to vector<8x128xf32>
      %27 = vector.shape_cast %24 : vector<8x128xf32> to vector<1x1x8x128xf32>
      tpu.vector_store %arg9[%c0_22, %c0_23, %c0_24, %c0_25], %27 {strides = array<i32>} : memref<1x4x8x128xf32, #tpu.memory_space<vmem>>, vector<1x1x8x128xf32>,
      %28 = arith.subf %6, %11 : vector<16x128xf32>
      %29 = arith.mulf %28, %28 : vector<16x128xf32>
      %c0_26 = arith.constant 0 : index
      %c1 = arith.constant 1 : index
      %c0_27 = arith.constant 0 : index
      %c0_28 = arith.constant 0 : index
      %30 = vector.load %arg9[%c0_26, %c1, %c0_27, %c0_28] : memref<1x4x8x128xf32, #tpu.memory_space<vmem>>, vector<1x1x8x128xf32>
      %31 = vector.shape_cast %30 : vector<1x1x8x128xf32> to vector<8x128xf32>
      %32 = vector.shape_cast %29 : vector<16x128xf32> to vector<2x8x128xf32>
      %cst_29 = arith.constant dense<0.000000e+00> : vector<8x128xf32>
      %33 = vector.multi_reduction <add>, %32, %cst_29 [0] : vector<2x8x128xf32> to vector<8x128xf32>
      %34 = arith.addf %31, %33 : vector<8x128xf32>
      %c0_30 = arith.constant 0 : index
      %c1_31 = arith.constant 1 : index
      %c0_32 = arith.constant 0 : index
      %c0_33 = arith.constant 0 : index
      %35 = vector.load %arg9[%c0_30, %c1_31, %c0_32, %c0_33] : memref<1x4x8x128xf32, #tpu.memory_space<vmem>>, vector<1x1x8x128xf32>
      %36 = vector.shape_cast %35 : vector<1x1x8x128xf32> to vector<8x128xf32>
      %37 = vector.shape_cast %34 : vector<8x128xf32> to vector<1x1x8x128xf32>
      tpu.vector_store %arg9[%c0_30, %c1_31, %c0_32, %c0_33], %37 {strides = array<i32>} : memref<1x4x8x128xf32, #tpu.memory_space<vmem>>, vector<1x1x8x128xf32>,
      %38 = arith.subf %7, %9 : vector<16x128xf32>
      %39 = arith.mulf %38, %38 : vector<16x128xf32>
      %c0_34 = arith.constant 0 : index
      %c2 = arith.constant 2 : index
      %c0_35 = arith.constant 0 : index
      %c0_36 = arith.constant 0 : index
      %40 = vector.load %arg9[%c0_34, %c2, %c0_35, %c0_36] : memref<1x4x8x128xf32, #tpu.memory_space<vmem>>, vector<1x1x8x128xf32>
      %41 = vector.shape_cast %40 : vector<1x1x8x128xf32> to vector<8x128xf32>
      %42 = vector.shape_cast %39 : vector<16x128xf32> to vector<2x8x128xf32>
      %cst_37 = arith.constant dense<0.000000e+00> : vector<8x128xf32>
      %43 = vector.multi_reduction <add>, %42, %cst_37 [0] : vector<2x8x128xf32> to vector<8x128xf32>
      %44 = arith.addf %41, %43 : vector<8x128xf32>
      %c0_38 = arith.constant 0 : index
      %c2_39 = arith.constant 2 : index
      %c0_40 = arith.constant 0 : index
      %c0_41 = arith.constant 0 : index
      %45 = vector.load %arg9[%c0_38, %c2_39, %c0_40, %c0_41] : memref<1x4x8x128xf32, #tpu.memory_space<vmem>>, vector<1x1x8x128xf32>
      %46 = vector.shape_cast %45 : vector<1x1x8x128xf32> to vector<8x128xf32>
      %47 = vector.shape_cast %44 : vector<8x128xf32> to vector<1x1x8x128xf32>
      tpu.vector_store %arg9[%c0_38, %c2_39, %c0_40, %c0_41], %47 {strides = array<i32>} : memref<1x4x8x128xf32, #tpu.memory_space<vmem>>, vector<1x1x8x128xf32>,
      %48 = arith.subf %8, %10 : vector<16x128xf32>
      %49 = arith.mulf %48, %48 : vector<16x128xf32>
      %c0_42 = arith.constant 0 : index
      %c3 = arith.constant 3 : index
      %c0_43 = arith.constant 0 : index
      %c0_44 = arith.constant 0 : index
      %50 = vector.load %arg9[%c0_42, %c3, %c0_43, %c0_44] : memref<1x4x8x128xf32, #tpu.memory_space<vmem>>, vector<1x1x8x128xf32>
      %51 = vector.shape_cast %50 : vector<1x1x8x128xf32> to vector<8x128xf32>
      %52 = vector.shape_cast %49 : vector<16x128xf32> to vector<2x8x128xf32>
      %cst_45 = arith.constant dense<0.000000e+00> : vector<8x128xf32>
      %53 = vector.multi_reduction <add>, %52, %cst_45 [0] : vector<2x8x128xf32> to vector<8x128xf32>
      %54 = arith.addf %51, %53 : vector<8x128xf32>
      %c0_46 = arith.constant 0 : index
      %c3_47 = arith.constant 3 : index
      %c0_48 = arith.constant 0 : index
      %c0_49 = arith.constant 0 : index
      %55 = vector.load %arg9[%c0_46, %c3_47, %c0_48, %c0_49] : memref<1x4x8x128xf32, #tpu.memory_space<vmem>>, vector<1x1x8x128xf32>
      %56 = vector.shape_cast %55 : vector<1x1x8x128xf32> to vector<8x128xf32>
      %57 = vector.shape_cast %54 : vector<8x128xf32> to vector<1x1x8x128xf32>
      tpu.vector_store %arg9[%c0_46, %c3_47, %c0_48, %c0_49], %57 {strides = array<i32>} : memref<1x4x8x128xf32, #tpu.memory_space<vmem>>, vector<1x1x8x128xf32>,
    } else {
    }
    %c0_i32_16 = arith.constant 0 : i32
    %15 = arith.cmpi sge, %1, %c0_i32_16 : i32
    %16 = arith.extui %15 : i1 to i32
    %c0_i32_17 = arith.constant 0 : i32
    %17 = arith.cmpi ne, %16, %c0_i32_17 : i32
    scf.if %17 {
      %18 = tpu.iota {dimensions = array<i32: 0>} : vector<16x128xi32>
      %c16_i32 = arith.constant 16 : i32
      %19 = arith.muli %1, %c16_i32 : i32
      %20 = vector.broadcast %19 : i32 to vector<16x128xi32>
      %21 = arith.addi %18, %20 : vector<16x128xi32>
      %c12_i32 = arith.constant 12 : i32
      %22 = vector.broadcast %c12_i32 : i32 to vector<16x128xi32>
      %23 = arith.cmpi slt, %21, %22 : vector<16x128xi32>
      %24 = arith.subf %5, %11 : vector<16x128xf32>
      %25 = arith.mulf %24, %24 : vector<16x128xf32>
      %cst = arith.constant 0.000000e+00 : f32
      %26 = vector.broadcast %cst : f32 to vector<16x128xf32>
      %27 = arith.select %23, %25, %26 : vector<16x128xi1>, vector<16x128xf32>
      %c0_18 = arith.constant 0 : index
      %c0_19 = arith.constant 0 : index
      %c0_20 = arith.constant 0 : index
      %c0_21 = arith.constant 0 : index
      %28 = vector.load %arg9[%c0_18, %c0_19, %c0_20, %c0_21] : memref<1x4x8x128xf32, #tpu.memory_space<vmem>>, vector<1x1x8x128xf32>
      %29 = vector.shape_cast %28 : vector<1x1x8x128xf32> to vector<8x128xf32>
      %30 = vector.shape_cast %27 : vector<16x128xf32> to vector<2x8x128xf32>
      %cst_22 = arith.constant dense<0.000000e+00> : vector<8x128xf32>
      %31 = vector.multi_reduction <add>, %30, %cst_22 [0] : vector<2x8x128xf32> to vector<8x128xf32>
      %32 = arith.addf %29, %31 : vector<8x128xf32>
      %c0_23 = arith.constant 0 : index
      %c0_24 = arith.constant 0 : index
      %c0_25 = arith.constant 0 : index
      %c0_26 = arith.constant 0 : index
      %33 = vector.load %arg9[%c0_23, %c0_24, %c0_25, %c0_26] : memref<1x4x8x128xf32, #tpu.memory_space<vmem>>, vector<1x1x8x128xf32>
      %34 = vector.shape_cast %33 : vector<1x1x8x128xf32> to vector<8x128xf32>
      %35 = vector.shape_cast %32 : vector<8x128xf32> to vector<1x1x8x128xf32>
      tpu.vector_store %arg9[%c0_23, %c0_24, %c0_25, %c0_26], %35 {strides = array<i32>} : memref<1x4x8x128xf32, #tpu.memory_space<vmem>>, vector<1x1x8x128xf32>,
      %36 = arith.subf %6, %11 : vector<16x128xf32>
      %37 = arith.mulf %36, %36 : vector<16x128xf32>
      %cst_27 = arith.constant 0.000000e+00 : f32
      %38 = vector.broadcast %cst_27 : f32 to vector<16x128xf32>
      %39 = arith.select %23, %37, %38 : vector<16x128xi1>, vector<16x128xf32>
      %c0_28 = arith.constant 0 : index
      %c1 = arith.constant 1 : index
      %c0_29 = arith.constant 0 : index
      %c0_30 = arith.constant 0 : index
      %40 = vector.load %arg9[%c0_28, %c1, %c0_29, %c0_30] : memref<1x4x8x128xf32, #tpu.memory_space<vmem>>, vector<1x1x8x128xf32>
      %41 = vector.shape_cast %40 : vector<1x1x8x128xf32> to vector<8x128xf32>
      %42 = vector.shape_cast %39 : vector<16x128xf32> to vector<2x8x128xf32>
      %cst_31 = arith.constant dense<0.000000e+00> : vector<8x128xf32>
      %43 = vector.multi_reduction <add>, %42, %cst_31 [0] : vector<2x8x128xf32> to vector<8x128xf32>
      %44 = arith.addf %41, %43 : vector<8x128xf32>
      %c0_32 = arith.constant 0 : index
      %c1_33 = arith.constant 1 : index
      %c0_34 = arith.constant 0 : index
      %c0_35 = arith.constant 0 : index
      %45 = vector.load %arg9[%c0_32, %c1_33, %c0_34, %c0_35] : memref<1x4x8x128xf32, #tpu.memory_space<vmem>>, vector<1x1x8x128xf32>
      %46 = vector.shape_cast %45 : vector<1x1x8x128xf32> to vector<8x128xf32>
      %47 = vector.shape_cast %44 : vector<8x128xf32> to vector<1x1x8x128xf32>
      tpu.vector_store %arg9[%c0_32, %c1_33, %c0_34, %c0_35], %47 {strides = array<i32>} : memref<1x4x8x128xf32, #tpu.memory_space<vmem>>, vector<1x1x8x128xf32>,
      %48 = arith.subf %7, %9 : vector<16x128xf32>
      %49 = arith.mulf %48, %48 : vector<16x128xf32>
      %cst_36 = arith.constant 0.000000e+00 : f32
      %50 = vector.broadcast %cst_36 : f32 to vector<16x128xf32>
      %51 = arith.select %23, %49, %50 : vector<16x128xi1>, vector<16x128xf32>
      %c0_37 = arith.constant 0 : index
      %c2 = arith.constant 2 : index
      %c0_38 = arith.constant 0 : index
      %c0_39 = arith.constant 0 : index
      %52 = vector.load %arg9[%c0_37, %c2, %c0_38, %c0_39] : memref<1x4x8x128xf32, #tpu.memory_space<vmem>>, vector<1x1x8x128xf32>
      %53 = vector.shape_cast %52 : vector<1x1x8x128xf32> to vector<8x128xf32>
      %54 = vector.shape_cast %51 : vector<16x128xf32> to vector<2x8x128xf32>
      %cst_40 = arith.constant dense<0.000000e+00> : vector<8x128xf32>
      %55 = vector.multi_reduction <add>, %54, %cst_40 [0] : vector<2x8x128xf32> to vector<8x128xf32>
      %56 = arith.addf %53, %55 : vector<8x128xf32>
      %c0_41 = arith.constant 0 : index
      %c2_42 = arith.constant 2 : index
      %c0_43 = arith.constant 0 : index
      %c0_44 = arith.constant 0 : index
      %57 = vector.load %arg9[%c0_41, %c2_42, %c0_43, %c0_44] : memref<1x4x8x128xf32, #tpu.memory_space<vmem>>, vector<1x1x8x128xf32>
      %58 = vector.shape_cast %57 : vector<1x1x8x128xf32> to vector<8x128xf32>
      %59 = vector.shape_cast %56 : vector<8x128xf32> to vector<1x1x8x128xf32>
      tpu.vector_store %arg9[%c0_41, %c2_42, %c0_43, %c0_44], %59 {strides = array<i32>} : memref<1x4x8x128xf32, #tpu.memory_space<vmem>>, vector<1x1x8x128xf32>,
      %60 = arith.subf %8, %10 : vector<16x128xf32>
      %61 = arith.mulf %60, %60 : vector<16x128xf32>
      %cst_45 = arith.constant 0.000000e+00 : f32
      %62 = vector.broadcast %cst_45 : f32 to vector<16x128xf32>
      %63 = arith.select %23, %61, %62 : vector<16x128xi1>, vector<16x128xf32>
      %c0_46 = arith.constant 0 : index
      %c3 = arith.constant 3 : index
      %c0_47 = arith.constant 0 : index
      %c0_48 = arith.constant 0 : index
      %64 = vector.load %arg9[%c0_46, %c3, %c0_47, %c0_48] : memref<1x4x8x128xf32, #tpu.memory_space<vmem>>, vector<1x1x8x128xf32>
      %65 = vector.shape_cast %64 : vector<1x1x8x128xf32> to vector<8x128xf32>
      %66 = vector.shape_cast %63 : vector<16x128xf32> to vector<2x8x128xf32>
      %cst_49 = arith.constant dense<0.000000e+00> : vector<8x128xf32>
      %67 = vector.multi_reduction <add>, %66, %cst_49 [0] : vector<2x8x128xf32> to vector<8x128xf32>
      %68 = arith.addf %65, %67 : vector<8x128xf32>
      %c0_50 = arith.constant 0 : index
      %c3_51 = arith.constant 3 : index
      %c0_52 = arith.constant 0 : index
      %c0_53 = arith.constant 0 : index
      %69 = vector.load %arg9[%c0_50, %c3_51, %c0_52, %c0_53] : memref<1x4x8x128xf32, #tpu.memory_space<vmem>>, vector<1x1x8x128xf32>
      %70 = vector.shape_cast %69 : vector<1x1x8x128xf32> to vector<8x128xf32>
      %71 = vector.shape_cast %68 : vector<8x128xf32> to vector<1x1x8x128xf32>
      tpu.vector_store %arg9[%c0_50, %c3_51, %c0_52, %c0_53], %71 {strides = array<i32>} : memref<1x4x8x128xf32, #tpu.memory_space<vmem>>, vector<1x1x8x128xf32>,
    } else {
    }
    return
  }
  func.func @transform_0(%arg0: i32, %arg1: i32) -> (i32, i32) {
    %c1_i32 = arith.constant 1 : i32
    %0 = arith.muli %arg0, %c1_i32 : i32
    %1 = arith.addi %0, %arg1 : i32
    %c0_i32 = arith.constant 0 : i32
    %c0_i32_0 = arith.constant 0 : i32
    return %1, %c0_i32 : i32, i32
  }
  func.func @transform_1(%arg0: i32, %arg1: i32) -> (i32, i32) {
    %c1_i32 = arith.constant 1 : i32
    %0 = arith.muli %arg0, %c1_i32 : i32
    %1 = arith.addi %0, %arg1 : i32
    %c0_i32 = arith.constant 0 : i32
    %c0_i32_0 = arith.constant 0 : i32
    return %1, %c0_i32 : i32, i32
  }
  func.func @transform_2(%arg0: i32, %arg1: i32) -> (i32, i32) {
    %c1_i32 = arith.constant 1 : i32
    %0 = arith.muli %arg0, %c1_i32 : i32
    %1 = arith.addi %0, %arg1 : i32
    %c0_i32 = arith.constant 0 : i32
    %c0_i32_0 = arith.constant 0 : i32
    return %1, %c0_i32 : i32, i32
  }
  func.func @transform_3(%arg0: i32, %arg1: i32) -> (i32, i32) {
    %c1_i32 = arith.constant 1 : i32
    %0 = arith.muli %arg0, %c1_i32 : i32
    %1 = arith.addi %0, %arg1 : i32
    %c0_i32 = arith.constant 0 : i32
    %c0_i32_0 = arith.constant 0 : i32
    return %1, %c0_i32 : i32, i32
  }
  func.func @transform_4(%arg0: i32, %arg1: i32) -> (i32, i32) {
    %c1_i32 = arith.constant 1 : i32
    %0 = arith.muli %arg0, %c1_i32 : i32
    %1 = arith.addi %0, %arg1 : i32
    %c0_i32 = arith.constant 0 : i32
    %c0_i32_0 = arith.constant 0 : i32
    return %1, %c0_i32 : i32, i32
  }
  func.func @transform_5(%arg0: i32, %arg1: i32) -> (i32, i32) {
    %c1_i32 = arith.constant 1 : i32
    %0 = arith.muli %arg0, %c1_i32 : i32
    %1 = arith.addi %0, %arg1 : i32
    %c0_i32 = arith.constant 0 : i32
    %c0_i32_0 = arith.constant 0 : i32
    return %1, %c0_i32 : i32, i32
  }
  func.func @transform_6(%arg0: i32, %arg1: i32) -> (i32, i32) {
    %c1_i32 = arith.constant 1 : i32
    %0 = arith.muli %arg0, %c1_i32 : i32
    %1 = arith.addi %0, %arg1 : i32
    %c0_i32 = arith.constant 0 : i32
    %c0_i32_0 = arith.constant 0 : i32
    return %1, %c0_i32 : i32, i32
  }
  func.func @transform_7(%arg0: i32, %arg1: i32) -> (i32, i32, i32, i32) {
    %c0_i32 = arith.constant 0 : i32
    %c0_i32_0 = arith.constant 0 : i32
    %c0_i32_1 = arith.constant 0 : i32
    %c0_i32_2 = arith.constant 0 : i32
    return %arg0, %c0_i32, %c0_i32_0, %c0_i32_1 : i32, i32, i32, i32
  }
}

module attributes {stable_mosaic.version = 11 : i64} {
  func.func @kernel(%arg0: i32, %arg1: i32, %arg2: memref<16x128xf32, #tpu.memory_space<vmem>>, %arg3: memref<16x128xf32, #tpu.memory_space<vmem>>, %arg4: memref<16x128xf32, #tpu.memory_space<vmem>>, %arg5: memref<1x2x8x128xf32, #tpu.memory_space<vmem>>) attributes {dimension_semantics = [#tpu.dimension_semantics<parallel>, #tpu.dimension_semantics<arbitrary>], iteration_bounds = array<i64: 1, 1>, scalar_prefetch = 0 : i64, scratch_operands = 0 : i64, tpu.core_type = #tpu.core_type<tc>, window_params = [{transform_indices = @transform_0, window_bounds = array<i64: 16, 128>}, {transform_indices = @transform_1, window_bounds = array<i64: 16, 128>}, {transform_indices = @transform_2, window_bounds = array<i64: 16, 128>}, {transform_indices = @transform_3, window_bounds = array<i64: 1, 2, 8, 128>}]} {
    %c1_i32 = arith.constant 1 : i32
    %0 = arith.muli %arg0, %c1_i32 : i32
    %1 = arith.addi %0, %arg1 : i32
    %c0_i32 = arith.constant 0 : i32
    %2 = arith.cmpi eq, %arg1, %c0_i32 : i32
    %3 = arith.extui %2 : i1 to i32
    %c0_i32_0 = arith.constant 0 : i32
    %4 = arith.cmpi ne, %3, %c0_i32_0 : i32
    scf.if %4 {
      %cst = arith.constant 0.000000e+00 : f32
      %14 = vector.broadcast %cst : f32 to vector<1x2x8x128xf32>
      %c0_10 = arith.constant 0 : index
      %c0_11 = arith.constant 0 : index
      %c0_12 = arith.constant 0 : index
      %c0_13 = arith.constant 0 : index
      %15 = vector.load %arg5[%c0_10, %c0_11, %c0_12, %c0_13] : memref<1x2x8x128xf32, #tpu.memory_space<vmem>>, vector<1x2x8x128xf32>
      tpu.vector_store %arg5[%c0_10, %c0_11, %c0_12, %c0_13], %14 {strides = array<i32>} : memref<1x2x8x128xf32, #tpu.memory_space<vmem>>, vector<1x2x8x128xf32>,
    } else {
    }
    %c0 = arith.constant 0 : index
    %c0_1 = arith.constant 0 : index
    %5 = vector.load %arg2[%c0, %c0_1] : memref<16x128xf32, #tpu.memory_space<vmem>>, vector<16x128xf32>
    %c0_2 = arith.constant 0 : index
    %c0_3 = arith.constant 0 : index
    %6 = vector.load %arg3[%c0_2, %c0_3] : memref<16x128xf32, #tpu.memory_space<vmem>>, vector<16x128xf32>
    %c0_4 = arith.constant 0 : index
    %c0_5 = arith.constant 0 : index
    %7 = vector.load %arg4[%c0_4, %c0_5] : memref<16x128xf32, #tpu.memory_space<vmem>>, vector<16x128xf32>
    %c0_i32_6 = arith.constant 0 : i32
    %8 = arith.cmpi slt, %1, %c0_i32_6 : i32
    %9 = arith.extui %8 : i1 to i32
    %c0_i32_7 = arith.constant 0 : i32
    %10 = arith.cmpi ne, %9, %c0_i32_7 : i32
    scf.if %10 {
      %14 = arith.subf %5, %7 : vector<16x128xf32>
      %15 = arith.mulf %14, %14 : vector<16x128xf32>
      %c0_10 = arith.constant 0 : index
      %c0_11 = arith.constant 0 : index
      %c0_12 = arith.constant 0 : index
      %c0_13 = arith.constant 0 : index
      %16 = vector.load %arg5[%c0_10, %c0_11, %c0_12, %c0_13] : memref<1x2x8x128xf32, #tpu.memory_space<vmem>>, vector<1x1x8x128xf32>
      %17 = vector.shape_cast %16 : vector<1x1x8x128xf32> to vector<8x128xf32>
      %18 = vector.shape_cast %15 : vector<16x128xf32> to vector<2x8x128xf32>
      %cst = arith.constant dense<0.000000e+00> : vector<8x128xf32>
      %19 = vector.multi_reduction <add>, %18, %cst [0] : vector<2x8x128xf32> to vector<8x128xf32>
      %20 = arith.addf %17, %19 : vector<8x128xf32>
      %c0_14 = arith.constant 0 : index
      %c0_15 = arith.constant 0 : index
      %c0_16 = arith.constant 0 : index
      %c0_17 = arith.constant 0 : index
      %21 = vector.load %arg5[%c0_14, %c0_15, %c0_16, %c0_17] : memref<1x2x8x128xf32, #tpu.memory_space<vmem>>, vector<1x1x8x128xf32>
      %22 = vector.shape_cast %21 : vector<1x1x8x128xf32> to vector<8x128xf32>
      %23 = vector.shape_cast %20 : vector<8x128xf32> to vector<1x1x8x128xf32>
      tpu.vector_store %arg5[%c0_14, %c0_15, %c0_16, %c0_17], %23 {strides = array<i32>} : memref<1x2x8x128xf32, #tpu.memory_space<vmem>>, vector<1x1x8x128xf32>,
      %24 = arith.subf %6, %7 : vector<16x128xf32>
      %25 = arith.mulf %24, %24 : vector<16x128xf32>
      %c0_18 = arith.constant 0 : index
      %c1 = arith.constant 1 : index
      %c0_19 = arith.constant 0 : index
      %c0_20 = arith.constant 0 : index
      %26 = vector.load %arg5[%c0_18, %c1, %c0_19, %c0_20] : memref<1x2x8x128xf32, #tpu.memory_space<vmem>>, vector<1x1x8x128xf32>
      %27 = vector.shape_cast %26 : vector<1x1x8x128xf32> to vector<8x128xf32>
      %28 = vector.shape_cast %25 : vector<16x128xf32> to vector<2x8x128xf32>
      %cst_21 = arith.constant dense<0.000000e+00> : vector<8x128xf32>
      %29 = vector.multi_reduction <add>, %28, %cst_21 [0] : vector<2x8x128xf32> to vector<8x128xf32>
      %30 = arith.addf %27, %29 : vector<8x128xf32>
      %c0_22 = arith.constant 0 : index
      %c1_23 = arith.constant 1 : index
      %c0_24 = arith.constant 0 : index
      %c0_25 = arith.constant 0 : index
      %31 = vector.load %arg5[%c0_22, %c1_23, %c0_24, %c0_25] : memref<1x2x8x128xf32, #tpu.memory_space<vmem>>, vector<1x1x8x128xf32>
      %32 = vector.shape_cast %31 : vector<1x1x8x128xf32> to vector<8x128xf32>
      %33 = vector.shape_cast %30 : vector<8x128xf32> to vector<1x1x8x128xf32>
      tpu.vector_store %arg5[%c0_22, %c1_23, %c0_24, %c0_25], %33 {strides = array<i32>} : memref<1x2x8x128xf32, #tpu.memory_space<vmem>>, vector<1x1x8x128xf32>,
    } else {
    }
    %c0_i32_8 = arith.constant 0 : i32
    %11 = arith.cmpi sge, %1, %c0_i32_8 : i32
    %12 = arith.extui %11 : i1 to i32
    %c0_i32_9 = arith.constant 0 : i32
    %13 = arith.cmpi ne, %12, %c0_i32_9 : i32
    scf.if %13 {
      %14 = tpu.iota {dimensions = array<i32: 0>} : vector<16x128xi32>
      %c16_i32 = arith.constant 16 : i32
      %15 = arith.muli %1, %c16_i32 : i32
      %16 = vector.broadcast %15 : i32 to vector<16x128xi32>
      %17 = arith.addi %14, %16 : vector<16x128xi32>
      %c3_i32 = arith.constant 3 : i32
      %18 = vector.broadcast %c3_i32 : i32 to vector<16x128xi32>
      %19 = arith.cmpi slt, %17, %18 : vector<16x128xi32>
      %20 = arith.subf %5, %7 : vector<16x128xf32>
      %21 = arith.mulf %20, %20 : vector<16x128xf32>
      %cst = arith.constant 0.000000e+00 : f32
      %22 = vector.broadcast %cst : f32 to vector<16x128xf32>
      %23 = arith.select %19, %21, %22 : vector<16x128xi1>, vector<16x128xf32>
      %c0_10 = arith.constant 0 : index
      %c0_11 = arith.constant 0 : index
      %c0_12 = arith.constant 0 : index
      %c0_13 = arith.constant 0 : index
      %24 = vector.load %arg5[%c0_10, %c0_11, %c0_12, %c0_13] : memref<1x2x8x128xf32, #tpu.memory_space<vmem>>, vector<1x1x8x128xf32>
      %25 = vector.shape_cast %24 : vector<1x1x8x128xf32> to vector<8x128xf32>
      %26 = vector.shape_cast %23 : vector<16x128xf32> to vector<2x8x128xf32>
      %cst_14 = arith.constant dense<0.000000e+00> : vector<8x128xf32>
      %27 = vector.multi_reduction <add>, %26, %cst_14 [0] : vector<2x8x128xf32> to vector<8x128xf32>
      %28 = arith.addf %25, %27 : vector<8x128xf32>
      %c0_15 = arith.constant 0 : index
      %c0_16 = arith.constant 0 : index
      %c0_17 = arith.constant 0 : index
      %c0_18 = arith.constant 0 : index
      %29 = vector.load %arg5[%c0_15, %c0_16, %c0_17, %c0_18] : memref<1x2x8x128xf32, #tpu.memory_space<vmem>>, vector<1x1x8x128xf32>
      %30 = vector.shape_cast %29 : vector<1x1x8x128xf32> to vector<8x128xf32>
      %31 = vector.shape_cast %28 : vector<8x128xf32> to vector<1x1x8x128xf32>
      tpu.vector_store %arg5[%c0_15, %c0_16, %c0_17, %c0_18], %31 {strides = array<i32>} : memref<1x2x8x128xf32, #tpu.memory_space<vmem>>, vector<1x1x8x128xf32>,
      %32 = arith.subf %6, %7 : vector<16x128xf32>
      %33 = arith.mulf %32, %32 : vector<16x128xf32>
      %cst_19 = arith.constant 0.000000e+00 : f32
      %34 = vector.broadcast %cst_19 : f32 to vector<16x128xf32>
      %35 = arith.select %19, %33, %34 : vector<16x128xi1>, vector<16x128xf32>
      %c0_20 = arith.constant 0 : index
      %c1 = arith.constant 1 : index
      %c0_21 = arith.constant 0 : index
      %c0_22 = arith.constant 0 : index
      %36 = vector.load %arg5[%c0_20, %c1, %c0_21, %c0_22] : memref<1x2x8x128xf32, #tpu.memory_space<vmem>>, vector<1x1x8x128xf32>
      %37 = vector.shape_cast %36 : vector<1x1x8x128xf32> to vector<8x128xf32>
      %38 = vector.shape_cast %35 : vector<16x128xf32> to vector<2x8x128xf32>
      %cst_23 = arith.constant dense<0.000000e+00> : vector<8x128xf32>
      %39 = vector.multi_reduction <add>, %38, %cst_23 [0] : vector<2x8x128xf32> to vector<8x128xf32>
      %40 = arith.addf %37, %39 : vector<8x128xf32>
      %c0_24 = arith.constant 0 : index
      %c1_25 = arith.constant 1 : index
      %c0_26 = arith.constant 0 : index
      %c0_27 = arith.constant 0 : index
      %41 = vector.load %arg5[%c0_24, %c1_25, %c0_26, %c0_27] : memref<1x2x8x128xf32, #tpu.memory_space<vmem>>, vector<1x1x8x128xf32>
      %42 = vector.shape_cast %41 : vector<1x1x8x128xf32> to vector<8x128xf32>
      %43 = vector.shape_cast %40 : vector<8x128xf32> to vector<1x1x8x128xf32>
      tpu.vector_store %arg5[%c0_24, %c1_25, %c0_26, %c0_27], %43 {strides = array<i32>} : memref<1x2x8x128xf32, #tpu.memory_space<vmem>>, vector<1x1x8x128xf32>,
    } else {
    }
    return
  }
  func.func @transform_0(%arg0: i32, %arg1: i32) -> (i32, i32) {
    %c1_i32 = arith.constant 1 : i32
    %0 = arith.muli %arg0, %c1_i32 : i32
    %1 = arith.addi %0, %arg1 : i32
    %c0_i32 = arith.constant 0 : i32
    %c0_i32_0 = arith.constant 0 : i32
    return %1, %c0_i32 : i32, i32
  }
  func.func @transform_1(%arg0: i32, %arg1: i32) -> (i32, i32) {
    %c1_i32 = arith.constant 1 : i32
    %0 = arith.muli %arg0, %c1_i32 : i32
    %1 = arith.addi %0, %arg1 : i32
    %c0_i32 = arith.constant 0 : i32
    %c0_i32_0 = arith.constant 0 : i32
    return %1, %c0_i32 : i32, i32
  }
  func.func @transform_2(%arg0: i32, %arg1: i32) -> (i32, i32) {
    %c1_i32 = arith.constant 1 : i32
    %0 = arith.muli %arg0, %c1_i32 : i32
    %1 = arith.addi %0, %arg1 : i32
    %c0_i32 = arith.constant 0 : i32
    %c0_i32_0 = arith.constant 0 : i32
    return %1, %c0_i32 : i32, i32
  }
  func.func @transform_3(%arg0: i32, %arg1: i32) -> (i32, i32, i32, i32) {
    %c0_i32 = arith.constant 0 : i32
    %c0_i32_0 = arith.constant 0 : i32
    %c0_i32_1 = arith.constant 0 : i32
    %c0_i32_2 = arith.constant 0 : i32
    return %arg0, %c0_i32, %c0_i32_0, %c0_i32_1 : i32, i32, i32, i32
  }
}

</mosaic_0001>

<bundles_post_ra>
// kernel: lih_loss_forward.3
= control target key start
LH: loop header
LB: loop body
LE: loop exit
PB: predicated region body
PF: predicated region fallthrough
CT: control target
= control target key end

     0   :  { %v148_v0 = vlaneseq  ;;  %s240_s0 = inlined_call_operand.vmem [shape: f32[3,128], index: 0, kind: input, shape index: {}]   ;;  %s241_s2 = inlined_call_operand.vmem [shape: f32[3,128], index: 2, kind: input, shape index: {}]   ;;  %s242_s1 = inlined_call_operand.vmem [shape: f32[3,128], index: 1, kind: input, shape index: {}]   ;;  %s243_s3 = inlined_call_operand.vmem [shape: f32[1,2,8,128], index: 3, kind: output, shape index: {}]  }
   0x1   :  { %v117_v1 = vld [vmem:[%s240_s0] sm:$0xff] }
   0x2   :  { %v121_v2 = vld [vmem:[%s241_s2] sm:$0xff]  ;;  %v149_v4 = vshrl.u32 %v148_v0, 7 }
   0x3   :  { %v119_v3 = vld [vmem:[%s242_s1] sm:$0xff]  ;;  %v157_v5 = vsub.f32 %v117_v1, %v121_v2 }
   0x4   :  { %v167_v6 = vsub.f32 %v119_v3, %v121_v2  ;;  %vm155_vm0 = vcmp.lt.s32.totalorder %v149_v4, 3 }
   0x5   :  { %v159_v7 = vmul.f32 %v157_v5, %v157_v5 }
   0x6   :  { %v169_v8 = vmul.f32 %v167_v6, %v167_v6 }
   0x7   :  { %v161_v9 = vsel %vm155_vm0, %v159_v7, 0.0 }
   0x8   :  { %v171_v10 = vsel %vm155_vm0, %v169_v8, 0.0  ;;  %166 = vst [vmem:[%s243_s3] sm:$0xff] %v161_v9 }
   0x9   :  { %203 = vst [vmem:[%s243_s3 + $0x8] sm:$0xff] %v171_v10 }

// kernel: lih_loss_forward.2
= control target key start
LH: loop header
LB: loop body
LE: loop exit
PB: predicated region body
PF: predicated region fallthrough
CT: control target
= control target key end

     0   :  { %v246_v0 = vlaneseq  ;;  %s451_s0 = inlined_call_operand.vmem [shape: f32[12,128], index: 0, kind: input, shape index: {}]   ;;  %s452_s6 = inlined_call_operand.vmem [shape: f32[12,128], index: 6, kind: input, shape index: {}]   ;;  %s453_s1 = inlined_call_operand.vmem [shape: f32[12,128], index: 1, kind: input, shape index: {}]   ;;  %s454_s2 = inlined_call_operand.vmem [shape: f32[12,128], index: 2, kind: input, shape index: {}]   ;;  %s455_s4 = inlined_call_operand.vmem [shape: f32[12,128], index: 4, kind: input, shape index: {}]   ;;  %s456_s3 = inlined_call_operand.vmem [shape: f32[12,128], index: 3, kind: input, shape index: {}]   ;;  %s457_s5 = inlined_call_operand.vmem [shape: f32[12,128], index: 5, kind: input, shape index: {}]   ;;  %s458_s7 = inlined_call_operand.vmem [shape: f32[1,4,8,128], index: 7, kind: output, shape index: {}]  }
   0x1   :  { %v189_v1 = vld [vmem:[%s451_s0] sm:$0xff]  ;;  %v190_v2 = vld [vmem:[%s451_s0 + $0x8] sm:$0xff] }
   0x2   :  { %v201_v3 = vld [vmem:[%s452_s6] sm:$0xff]  ;;  %v202_v4 = vld [vmem:[%s452_s6 + $0x8] sm:$0xff]  ;;  %v247_v5 = vshrl.u32 %v246_v0, 7 }
   0x3   :  { %v255_v6 = vsub.f32 %v189_v1, %v201_v3  ;;  %v191_v7 = vld [vmem:[%s453_s1] sm:$0xff]  ;;  %v192_v8 = vld [vmem:[%s453_s1 + $0x8] sm:$0xff]  ;;  %v256_v9 = vsub.f32 %v190_v2, %v202_v4 }
   0x4   :  { %v265_v10 = vsub.f32 %v191_v7, %v201_v3  ;;  %v266_v11 = vsub.f32 %v192_v8, %v202_v4  ;;  %v193_v12 = vld [vmem:[%s454_s2] sm:$0xff]  ;;  %v194_v13 = vld [vmem:[%s454_s2 + $0x8] sm:$0xff]  ;;  %v248_v15 = vadd.s32 8, %v247_v5 }
   0x5   :  { %v197_v14 = vld [vmem:[%s455_s4] sm:$0xff]  ;;  %v257_v16 = vmul.f32 %v255_v6, %v255_v6  ;;  %v198_v17 = vld [vmem:[%s455_s4 + $0x8] sm:$0xff]  ;;  %v258_v21 = vmul.f32 %v256_v9, %v256_v9 }
   0x6   :  { %v276_v18 = vsub.f32 %v193_v12, %v197_v14  ;;  %v195_v19 = vld [vmem:[%s456_s3] sm:$0xff]  ;;  %v196_v20 = vld [vmem:[%s456_s3 + $0x8] sm:$0xff]  ;;  %v267_v22 = vmul.f32 %v265_v10, %v265_v10  ;;  %v268_v23 = vmul.f32 %v266_v11, %v266_v11  ;;  %v277_v24 = vsub.f32 %v194_v13, %v198_v17 }
   0x7   :  { %v199_v25 = vld [vmem:[%s457_s5] sm:$0xff]  ;;  %v200_v26 = vld [vmem:[%s457_s5 + $0x8] sm:$0xff]  ;;  %vm254_vm0 = vcmp.lt.s32.totalorder %v248_v15, 12 }
   0x8   :  { %v278_v27 = vmul.f32 %v276_v18, %v276_v18  ;;  %v287_v28 = vsub.f32 %v195_v19, %v199_v25  ;;  %v288_v29 = vsub.f32 %v196_v20, %v200_v26  ;;  %v260_v30 = vsel %vm254_vm0, %v258_v21, 0.0 }
   0x9   :  { %v270_v31 = vsel %vm254_vm0, %v268_v23, 0.0  ;;  %v279_v32 = vmul.f32 %v277_v24, %v277_v24  ;;  %v262_v33 = vadd.f32 %v260_v30, %v257_v16 }
   0xa   :  { %v273_v34 = vadd.f32 %v270_v31, %v267_v22  ;;  %v289_v35 = vmul.f32 %v287_v28, %v287_v28  ;;  %v290_v36 = vmul.f32 %v288_v29, %v288_v29 }
   0xb   :  { %v281_v37 = vsel %vm254_vm0, %v279_v32, 0.0  ;;  %264 = vst [vmem:[%s458_s7] sm:$0xff] %v262_v33 }
   0xc   :  { %v284_v38 = vadd.f32 %v281_v37, %v278_v27  ;;  %v292_v39 = vsel %vm254_vm0, %v290_v36, 0.0  ;;  %351 = vst [vmem:[%s458_s7 + $0x8] sm:$0xff] %v273_v34 }
   0xd   :  { %v295_v40 = vadd.f32 %v292_v39, %v289_v35 }
   0xe   :  { %353 = vst [vmem:[%s458_s7 + $0x10] sm:$0xff] %v284_v38 }
   0xf   :  { %355 = vst [vmem:[%s458_s7 + $0x18] sm:$0xff] %v295_v40 }

</bundles_post_ra>
